<compile_context>
chip_gen: v7x
topology: tpu7x:2x2x1
jax: 0.10.0
libtpu: 0.0.40
codegen_flags: <defaults>
</compile_context>

<pallas_src>
import jax
import jax.numpy as jnp
from jax.experimental import pallas as pl
from jax.experimental.pallas import tpu as pltpu

INPUT_SIZE = 784
HIDDEN_SIZE = 500
NUM_CLASSES = 10

HIDDEN_PAD = 512          # 500 -> 512 : lane-aligned hidden dim (zero-padded)
OUT_PAD = 128             # 10  -> 128 : lane-dense output => unmasked full-vreg stores
OUT_DTYPE = jnp.bfloat16  # halve the padded-output HBM writeback
BATCH_ALIGN = 16          # bf16 packs 16 sublanes per vreg
MAX_BLOCK_ROWS = 1024     # large tiles amortize per-grid-step pipeline overhead

# TODO(synk): optional v5e/v6e MXU win: pre-pad the contraction dim 784 -> 896 in both
# w1 and x; skipped here because it would require an extra wrapper-side repack of x
# (only worth it if x can be produced K-padded upstream).


def _round_up(n, m):
    return (n + m - 1) // m * m


def _pick_block_rows(bp):
    """Pick a batch tile (multiple of 16) that divides bp (bp is 16-aligned).

    Prefers >= 2 grid steps (feeds both v7x TensorCores and lets the BlockSpec
    pipeline overlap), otherwise takes the largest divisor <= MAX_BLOCK_ROWS.
    """
    cap = min(MAX_BLOCK_ROWS, bp)
    cands = [t for t in range(BATCH_ALIGN, cap + 1, BATCH_ALIGN) if bp % t == 0]
    multi = [t for t in cands if bp // t >= 2]
    pool = multi if multi else cands
    return max(pool)


def bpnet_kernel(x_ref, w1_ref, b1_ref, w2_ref, b2_ref, o_ref):
    # In-kernel bf16 cast of the streamed activation tile (VPU op, hidden under MXU).
    x_bf16 = x_ref[...].astype(jnp.bfloat16)
    # fc1: (TB, 784) bf16 @ (784, 512) bf16 -> f32 accumulate on the MXU
    h = jnp.dot(x_bf16, w1_ref[...], preferred_element_type=jnp.float32)
    # bias + ReLU in f32 (padded hidden columns have zero weight & bias -> stay 0)
    h = jnp.maximum(h + b1_ref[...], 0.0)
    # fc2: cast activation back to bf16 for the MXU, accumulate in f32
    y = jnp.dot(h.astype(jnp.bfloat16), w2_ref[...],
                preferred_element_type=jnp.float32)
    # bias add in f32, lane-dense bf16 store
    o_ref[...] = (y + b2_ref[...]).astype(o_ref.dtype)


def prepare_params(w1, b1, w2, b2):
    """Pad + cast params once (weights already in (in, out) layout)."""
    w1_p = jnp.zeros((INPUT_SIZE, HIDDEN_PAD), jnp.bfloat16)
    w1_p = w1_p.at[:, :HIDDEN_SIZE].set(w1.astype(jnp.bfloat16))
    b1_p = jnp.zeros((1, HIDDEN_PAD), jnp.float32)
    b1_p = b1_p.at[:, :HIDDEN_SIZE].set(b1.reshape(1, -1).astype(jnp.float32))
    w2_p = jnp.zeros((HIDDEN_PAD, OUT_PAD), jnp.bfloat16)
    w2_p = w2_p.at[:HIDDEN_SIZE, :NUM_CLASSES].set(w2.astype(jnp.bfloat16))
    b2_p = jnp.zeros((1, OUT_PAD), jnp.float32)
    b2_p = b2_p.at[:, :NUM_CLASSES].set(b2.reshape(1, -1).astype(jnp.float32))
    return w1_p, b1_p, w2_p, b2_p


def bpnet_forward(x, w1_p, b1_p, w2_p, b2_p):
    """x: (B, INPUT_SIZE) float32. Returns (B, NUM_CLASSES) bfloat16 logits."""
    B = x.shape[0]
    Bp = _round_up(B, BATCH_ALIGN)
    TB = _pick_block_rows(Bp)

    if Bp != B:
        # TODO(synk): ragged batch -> one extra HBM pass over x. Keep upstream
        # batches 16-aligned (or add a masked tail tile) to avoid this copy.
        x = jnp.pad(x, ((0, Bp - B), (0, 0)))

    out = pl.pallas_call(
        bpnet_kernel,
        out_shape=jax.ShapeDtypeStruct((Bp, OUT_PAD), OUT_DTYPE),
        grid=(Bp // TB,),
        in_specs=[
            # x: f32, tiled along batch (double-buffered by the pipeline)
            pl.BlockSpec((TB, INPUT_SIZE), lambda i: (i, 0)),
            # weights/biases: constant index_map -> fetched once, VMEM-resident
            pl.BlockSpec((INPUT_SIZE, HIDDEN_PAD), lambda i: (0, 0)),
            pl.BlockSpec((1, HIDDEN_PAD), lambda i: (0, 0)),
            pl.BlockSpec((HIDDEN_PAD, OUT_PAD), lambda i: (0, 0)),
            pl.BlockSpec((1, OUT_PAD), lambda i: (0, 0)),
        ],
        out_specs=pl.BlockSpec((TB, OUT_PAD), lambda i: (i, 0)),
        compiler_params=pltpu.CompilerParams(
            dimension_semantics=("parallel",),   # shard batch tiles across TCs (v7x)
            vmem_limit_bytes=32 << 20,           # working set <= ~10 MiB at TB=1024
        ),
    )(x, w1_p, b1_p, w2_p, b2_p)

    # Strip batch padding and the lane-dense output padding.
    # (Downstream code that can consume the padded (Bp, 128) bf16 buffer directly
    #  should do so and skip this slice.)
    return out[:B, :NUM_CLASSES]


def init_params(key):
    """Deterministic init mimicking nn.Linear's U(-1/sqrt(fan_in), 1/sqrt(fan_in))."""
    k1, k2, k3, k4 = jax.random.split(key, 4)
    bound1 = 1.0 / jnp.sqrt(jnp.float32(INPUT_SIZE))
    bound2 = 1.0 / jnp.sqrt(jnp.float32(HIDDEN_SIZE))
    # Stored as (in, out) = PyTorch weight.T
    w1 = jax.random.uniform(k1, (INPUT_SIZE, HIDDEN_SIZE), jnp.float32,
                            minval=-bound1, maxval=bound1)
    b1 = jax.random.uniform(k2, (HIDDEN_SIZE,), jnp.float32,
                            minval=-bound1, maxval=bound1)
    w2 = jax.random.uniform(k3, (HIDDEN_SIZE, NUM_CLASSES), jnp.float32,
                            minval=-bound2, maxval=bound2)
    b2 = jax.random.uniform(k4, (NUM_CLASSES,), jnp.float32,
                            minval=-bound2, maxval=bound2)
    return w1, b1, w2, b2


def reference_forward_f32(x, w1, b1, w2, b2):
    h = jnp.maximum(x @ w1 + b1, 0.0)
    return h @ w2 + b2


def reference_forward_mixed(x, w1, b1, w2, b2):
    """Same bf16-input / f32-accumulate recipe as the kernel (f32 output)."""
    h = jnp.dot(x.astype(jnp.bfloat16), w1.astype(jnp.bfloat16),
                preferred_element_type=jnp.float32) + b1
    h = jnp.maximum(h, 0.0)
    y = jnp.dot(h.astype(jnp.bfloat16), w2.astype(jnp.bfloat16),
                preferred_element_type=jnp.float32) + b2
    return y


if __name__ == "__main__":
    key = jax.random.PRNGKey(0)
    kx, kp = jax.random.split(key)

    batch = 64  # 16-aligned -> no wrapper pad; TB=32 -> 2 grid steps exercise the pipeline
    x = jax.random.normal(kx, (batch, INPUT_SIZE), jnp.float32)
    w1, b1, w2, b2 = init_params(kp)
    w1_p, b1_p, w2_p, b2_p = prepare_params(w1, b1, w2, b2)

    fwd = jax.jit(bpnet_forward)
    y = fwd(x, w1_p, b1_p, w2_p, b2_p)
    jax.block_until_ready(y)

    assert y.shape == (batch, NUM_CLASSES)
    assert y.dtype == OUT_DTYPE

    y_f32 = y.astype(jnp.float32)
    y_ref_mixed = reference_forward_mixed(x, w1, b1, w2, b2)
    y_ref_f32 = reference_forward_f32(x, w1, b1, w2, b2)

    # Tight-ish check vs the identical mixed-precision recipe (only output bf16
    # rounding / accumulation-order differences remain).
    assert jnp.allclose(y_f32, y_ref_mixed, atol=1e-2, rtol=1e-2), \
        "mismatch vs mixed-precision reference"
    # Loose check vs the pure-f32 PyTorch-equivalent forward (bf16 rounding only).
    assert jnp.allclose(y_f32, y_ref_f32, atol=3e-2, rtol=3e-2), \
        "mismatch vs f32 reference"

    print("KERNEL_OK")
</pallas_src>

<mosaic_0001>
module attributes {stable_mosaic.version = 11 : i64} {
  func.func @bpnet_kernel(%arg0: i32, %arg1: memref<32x784xf32, #tpu.memory_space<vmem>>, %arg2: memref<784x512xbf16, #tpu.memory_space<vmem>>, %arg3: memref<1x512xf32, #tpu.memory_space<vmem>>, %arg4: memref<512x128xbf16, #tpu.memory_space<vmem>>, %arg5: memref<1x128xf32, #tpu.memory_space<vmem>>, %arg6: memref<32x128xbf16, #tpu.memory_space<vmem>>) attributes {dimension_semantics = [#tpu.dimension_semantics<parallel>], iteration_bounds = array<i64: 2>, scalar_prefetch = 0 : i64, scratch_operands = 0 : i64, tpu.core_type = #tpu.core_type<tc>, window_params = [{transform_indices = @transform_0, window_bounds = array<i64: 32, 784>}, {pipeline_mode = #tpu.pipeline_mode<synchronous>, transform_indices = @transform_1, window_bounds = array<i64: 784, 512>}, {pipeline_mode = #tpu.pipeline_mode<synchronous>, transform_indices = @transform_2, window_bounds = array<i64: 1, 512>}, {pipeline_mode = #tpu.pipeline_mode<synchronous>, transform_indices = @transform_3, window_bounds = array<i64: 512, 128>}, {pipeline_mode = #tpu.pipeline_mode<synchronous>, transform_indices = @transform_4, window_bounds = array<i64: 1, 128>}, {transform_indices = @transform_5, window_bounds = array<i64: 32, 128>}]} {
    %c0 = arith.constant 0 : index
    %c0_0 = arith.constant 0 : index
    %0 = vector.load %arg1[%c0, %c0_0] : memref<32x784xf32, #tpu.memory_space<vmem>>, vector<32x784xf32>
    %1 = arith.truncf %0 : vector<32x784xf32> to vector<32x784xbf16>
    %c0_1 = arith.constant 0 : index
    %c0_2 = arith.constant 0 : index
    %2 = vector.load %arg2[%c0_1, %c0_2] : memref<784x512xbf16, #tpu.memory_space<vmem>>, vector<784x512xbf16>
    %cst = arith.constant dense<0.000000e+00> : vector<32x512xf32>
    %3 = tpu.matmul %1, %2, %cst {dimension_numbers = #tpu.dot_dimension_numbers<[1], [0], [0], [1], [0, 0, 1, 1], [], []>} : vector<32x784xbf16>, vector<784x512xbf16>, vector<32x512xf32> -> vector<32x512xf32>
    %c0_3 = arith.constant 0 : index
    %c0_4 = arith.constant 0 : index
    %4 = vector.load %arg3[%c0_3, %c0_4] : memref<1x512xf32, #tpu.memory_space<vmem>>, vector<1x512xf32>
    %5 = vector.broadcast %4 : vector<1x512xf32> to vector<32x512xf32>
    %6 = arith.addf %3, %5 : vector<32x512xf32>
    %cst_5 = arith.constant 0.000000e+00 : f32
    %7 = vector.broadcast %cst_5 : f32 to vector<32x512xf32>
    %8 = arith.maximumf %6, %7 : vector<32x512xf32>
    %9 = arith.truncf %8 : vector<32x512xf32> to vector<32x512xbf16>
    %c0_6 = arith.constant 0 : index
    %c0_7 = arith.constant 0 : index
    %10 = vector.load %arg4[%c0_6, %c0_7] : memref<512x128xbf16, #tpu.memory_space<vmem>>, vector<512x128xbf16>
    %cst_8 = arith.constant dense<0.000000e+00> : vector<32x128xf32>
    %11 = tpu.matmul %9, %10, %cst_8 {dimension_numbers = #tpu.dot_dimension_numbers<[1], [0], [0], [1], [0, 0, 1, 1], [], []>} : vector<32x512xbf16>, vector<512x128xbf16>, vector<32x128xf32> -> vector<32x128xf32>
    %c0_9 = arith.constant 0 : index
    %c0_10 = arith.constant 0 : index
    %12 = vector.load %arg5[%c0_9, %c0_10] : memref<1x128xf32, #tpu.memory_space<vmem>>, vector<1x128xf32>
    %13 = vector.broadcast %12 : vector<1x128xf32> to vector<32x128xf32>
    %14 = arith.addf %11, %13 : vector<32x128xf32>
    %15 = arith.truncf %14 : vector<32x128xf32> to vector<32x128xbf16>
    %c0_11 = arith.constant 0 : index
    %c0_12 = arith.constant 0 : index
    %16 = vector.load %arg6[%c0_11, %c0_12] : memref<32x128xbf16, #tpu.memory_space<vmem>>, vector<32x128xbf16>
    tpu.vector_store %arg6[%c0_11, %c0_12], %15 {strides = array<i32>} : memref<32x128xbf16, #tpu.memory_space<vmem>>, vector<32x128xbf16>,
    return
  }
  func.func @transform_0(%arg0: i32) -> (i32, i32) {
    %c0_i32 = arith.constant 0 : i32
    %c0_i32_0 = arith.constant 0 : i32
    return %arg0, %c0_i32 : i32, i32
  }
  func.func @transform_1(%arg0: i32) -> (i32, i32) {
    %c0_i32 = arith.constant 0 : i32
    %c0_i32_0 = arith.constant 0 : i32
    %c0_i32_1 = arith.constant 0 : i32
    return %c0_i32, %c0_i32_0 : i32, i32
  }
  func.func @transform_2(%arg0: i32) -> (i32, i32) {
    %c0_i32 = arith.constant 0 : i32
    %c0_i32_0 = arith.constant 0 : i32
    %c0_i32_1 = arith.constant 0 : i32
    return %c0_i32, %c0_i32_0 : i32, i32
  }
  func.func @transform_3(%arg0: i32) -> (i32, i32) {
    %c0_i32 = arith.constant 0 : i32
    %c0_i32_0 = arith.constant 0 : i32
    %c0_i32_1 = arith.constant 0 : i32
    return %c0_i32, %c0_i32_0 : i32, i32
  }
  func.func @transform_4(%arg0: i32) -> (i32, i32) {
    %c0_i32 = arith.constant 0 : i32
    %c0_i32_0 = arith.constant 0 : i32
    %c0_i32_1 = arith.constant 0 : i32
    return %c0_i32, %c0_i32_0 : i32, i32
  }
  func.func @transform_5(%arg0: i32) -> (i32, i32) {
    %c0_i32 = arith.constant 0 : i32
    %c0_i32_0 = arith.constant 0 : i32
    return %arg0, %c0_i32 : i32, i32
  }
}

</mosaic_0001>

<bundles_post_ra>
// kernel: bpnet_forward.1
= control target key start
LH: loop header
LB: loop body
LE: loop exit
PB: predicated region body
PF: predicated region fallthrough
CT: control target
= control target key end

     0   :  { %10 = vsyncpa [#allocation3], 0  ;;  %s3608_s0 = inlined_call_operand.hbm [shape: f32[64,784], index: 0, kind: input, shape index: {}]   ;;  %s3609_s1 = inlined_call_operand.hbm [shape: bf16[784,512], index: 1, kind: input, shape index: {}]   ;;  %s3610_s2 = inlined_call_operand.vmem [shape: f32[1,512], index: 2, kind: input, shape index: {}]   ;;  %s3611_s3 = inlined_call_operand.hbm [shape: bf16[512,128], index: 3, kind: input, shape index: {}]   ;;  %s3612_s4 = inlined_call_operand.vmem [shape: f32[1,128], index: 4, kind: input, shape index: {}]   ;;  %s3613_s5 = inlined_call_operand.vmem [shape: bf16[64,128], index: 5, kind: output, shape index: {}]  }
   0x1   :  { %12 = vsyncpa [#allocation3 + $0x1], 0 }
   0x2   :  { %13 = vsyncpa [#allocation5], 0  ;;  %s3390_s18 = smov 0   ;;  %s3392_s19 = smov 0  }
   0x3   :  { %s3394_s20 = smov 0   ;;  %s3396_s21 = smov 0  }
   0x4 LB: > { %s2440_s22 = sadd.s32 4294967295, %s3348_s21   ;;  %p39_p0 = scmp.ne.s32.totalorder %s3340_s19, %s3336_s18  ;;  %s3348_s21 = sphi %s3396_s21, %s3629_s21   ;;  %s3344_s20 = sphi %s3394_s20, %s3628_s20   ;;  %s3340_s19 = sphi %s3392_s19, %s3627_s19   ;;  %s3336_s18 = sphi %s3390_s18, %s3626_s18  }
   0x5   : > { %p3412_p1 = scmp.eq.s32.totalorder %s2440_s22, 0  ;;  %p2442_p2 = scmp.ge.s32.totalorder %s3348_s21, 1 }
   0x6   : > { %p160_p3 = scmp.lt.s32.totalorder %s3348_s21, 3  ;;  %s3350_s26 = smov [#allocation4]  }
   0x7   : > { %s3618_s23 = scalar_select %p3412_p1, 1, 0 }
   0x8   : > { %p3420_p4 = por %p3412_p1, %p39_p0  ;;  %p3424_p5 = pnand %p2442_p2, %p160_p3 }
   0x9   : > { %s172_s27 = sshll.u32 %s3350_s26, 4  ;;  %s3351_s29 = smov [#allocation6]   ;;  %s173_s27 = int_to_ptr.vmem [resolvable:$true] %s172_s27 }
   0xa   : > { %s3619_s24 = scalar_select %p3420_p4, 1, 0 }
   0xb   : > { %s3620_s25 = scalar_select %p3424_p5, 1, 0 }
   0xc   : > { %p2841_p6 = pneg %p3424_p5  ;;  %s188_s30 = sshll.u32 %s3351_s29, 4  ;;  %s3436_s30 = int_to_ptr.vmem [resolvable:$true] %s188_s30 }
   0xd   : > { %s3224_s8 = scalar_lea.hbm %s3609_s1, 25088 }
   0xe   : > { %p3432_p7 = pnand %p2841_p6, %p3412_p1  ;;  %p3225_p8 = scmp.ne.s32.totalorder %s3609_s1, %s3224_s8 }
   0xf   : > { %p3231_p12 = scmp.lt.u32.totalorder %s3224_s8, %s3609_s1 }
  0x10   : > { %p3226_p9 = pneg %p3432_p7 }
  0x12   : > { %p3227_p10 = pnand %p3226_p9, %p3225_p8 }
  0x14   : > { %p3228_p11 = pneg %p3227_p10 }
  0x16   : > { %p3233_p13 = pnand %p3231_p12, %p3228_p11 }
  0x18   : > { %3236 = shalt.err (!%p3233_p13)
}
  0x19   : > { %s3237_s13 = scalar_lea.vmem %s173_s27, 25088  ;;  %p3245_p6 = scmp.lt.s32.totalorder %s173_s27, %s173_s27 }
  0x1a   : > { %p3238_p0 = scmp.ne.s32.totalorder %s173_s27, %s3237_s13  ;;  %p3246_p1 = scmp.lt.s32.totalorder %s3237_s13, %s3237_s13 }
  0x1c   : > { %p3240_p2 = pnand %p3238_p0, %p3226_p9  ;;  %p3247_p4 = por %p3246_p1, %p3245_p6 }
  0x1e   : > { %p3241_p3 = pneg %p3240_p2 }
  0x20   : > { %p3248_p5 = pnand %p3247_p4, %p3241_p3 }
  0x22   : > { %3251 = shalt.err (!%p3248_p5)
}
  0x23   : > { %s3352_s14 = smov 256   ;;  %s3353_s15 = smov 16  }
  0x24   : > { %2844 = dma.hbm_to_vmem [thread:$0]  (!%p3432_p7), %s3609_s1, 25088, %s173_s27, [#allocation5], %s3352_s14, %s3352_s14, %s3353_s15  }
  0x25   : > { %s3252_s29 = scalar_lea.hbm %s3611_s3, 4096 }
  0x26   : > { %p3253_p8 = scmp.ne.s32.totalorder %s3611_s3, %s3252_s29  ;;  %p3259_p5 = scmp.lt.u32.totalorder %s3252_s29, %s3611_s3 }
  0x28   : > { %p3255_p1 = pnand %p3253_p8, %p3226_p9 }
  0x2a   : > { %p3256_p4 = pneg %p3255_p1 }
  0x2c   : > { %p3261_p10 = pnand %p3259_p5, %p3256_p4 }
  0x2e   : > { %3264 = shalt.err (!%p3261_p10)
}
  0x2f   : > { %s3265_s27 = scalar_lea.vmem %s3436_s30, 4096  ;;  %p3273_p0 = scmp.lt.s32.totalorder %s3436_s30, %s3436_s30 }
  0x30   : > { %p3266_p11 = scmp.ne.s32.totalorder %s3436_s30, %s3265_s27  ;;  %p3274_p2 = scmp.lt.s32.totalorder %s3265_s27, %s3265_s27 }
  0x32   : > { %p3268_p12 = pnand %p3266_p11, %p3226_p9  ;;  %p3275_p3 = por %p3274_p2, %p3273_p0 }
  0x34   : > { %p3269_p13 = pneg %p3268_p12 }
  0x36   : > { %p3276_p6 = pnand %p3275_p3, %p3269_p13 }
  0x38   : > { %3279 = shalt.err (!%p3276_p6)
}
  0x39   : > { %s3354_s10 = smov 64   ;;  %s3355_s11 = smov 4  }
  0x3a   : > { %2847 = dma.hbm_to_vmem [thread:$0]  (!%p3432_p7), %s3611_s3, 4096, %s3436_s30, [#allocation5], %s3354_s10, %s3354_s10, %s3355_s11  }
  0x3b   : > { %s3486_s14 = sadd.s32 1, %s3348_s21   ;;  %s26_s16 = sadd.s32 1, %s3344_s20 }
  0x3c   : > { %s23_s15 = ssub.s32 %s3348_s21, %s3486_s14  ;;  %p33_p8 = scmp.ne.s32.totalorder %s3344_s20, %s3340_s19 }
  0x3d   : > { %p24_p9 = scmp.eq.s32.totalorder %s23_s15, 0  ;;  %p34_p1 = scmp.eq.s32.totalorder %s3348_s21, 0 }
  0x3e   : > { %p2854_p5 = scmp.lt.s32.totalorder %s3348_s21, 2  ;;  %s205_s18 = sand.u32 1, %s3344_s20  }
  0x3f   : > { %s3495_s17 = scalar_select %p24_p9, %s3344_s20, %s26_s16  }
  0x40   : > { %p35_p4 = por %p34_p1, %p33_p8  ;;  %s2829_s26 = smul.u32 3584, %s3348_s21 }
  0x41   : > { %s2828_s29 = smul.u32 224, %s205_s18  ;;  %s3511_s27 = scalar_lea.sflag [#allocation3], %s205_s18 }
  0x42   : > { %s3503_s7 = scalar_lea.hbm %s3608_s0, %s2829_s26  ;;  %p3505_p7 = pnand %p2854_p5, %p35_p4 }
  0x43   : > { %s209_s8 = scalar_lea.vmem [#allocation2], %s2828_s29  ;;  %s3280_s10 = scalar_lea.hbm %s3503_s7, 3584 }
  0x44   : > { %s217_s9 = sshll.u32 %s209_s8, 4  ;;  %p3281_p10 = scmp.ne.s32.totalorder %s3503_s7, %s3280_s10  ;;  %s3509_s9 = int_to_ptr.vmem [resolvable:$true] %s217_s9 }
  0x45   : > { %p3282_p11 = pneg %p3505_p7  ;;  %s3285_s13 = scalar_lea.hbm %s3608_s0, 7168 }
  0x46   : > { %p3286_p0 = scmp.lt.u32.totalorder %s3503_s7, %s3608_s0  ;;  %p3287_p2 = scmp.lt.u32.totalorder %s3285_s13, %s3280_s10 }
  0x47   : > { %p3283_p12 = pnand %p3282_p11, %p3281_p10  ;;  %p3289_p6 = scmp.lt.u32.totalorder %s3280_s10, %s3503_s7 }
  0x48   : > { %p3288_p3 = por %p3287_p2, %p3286_p0 }
  0x49   : > { %p3284_p13 = pneg %p3283_p12 }
  0x4a   : > { %p3290_p9 = por %p3289_p6, %p3288_p3 }
  0x4c   : > { %p3291_p8 = pnand %p3290_p9, %p3284_p13 }
  0x4e   : > { %3294 = shalt.err (!%p3291_p8)
}
  0x4f   : > { %s3295_s18 = scalar_lea.vmem %s3509_s9, 3584  ;;  %s3356_s26 = smov [#allocation2]  }
  0x50   : > { %p3296_p1 = scmp.ne.s32.totalorder %s3509_s9, %s3295_s18  ;;  %s3300_s29 = sshll.u32 %s3356_s26, 4  ;;  %s3301_s29 = int_to_ptr.vmem [resolvable:$false] %s3300_s29 }
  0x51   : > { %s3302_s28 = scalar_lea.vmem %s3301_s29, 7168  ;;  %p3303_p10 = scmp.lt.s32.totalorder %s3509_s9, %s3301_s29 }
  0x52   : > { %p3298_p4 = pnand %p3296_p1, %p3282_p11  ;;  %p3304_p12 = scmp.lt.s32.totalorder %s3302_s28, %s3295_s18 }
  0x54   : > { %p3299_p5 = pneg %p3298_p4  ;;  %p3305_p0 = por %p3304_p12, %p3303_p10 }
  0x56   : > { %p3306_p2 = pnand %p3305_p0, %p3299_p5 }
  0x58   : > { %3309 = shalt.err (!%p3306_p2)
}
  0x59   : > { %s3357_s6 = smov 896   ;;  %s3358_s8 = smov 56  }
  0x5a   : > { %2851 = dma.hbm_to_vmem [thread:$0]  (!%p3505_p7), %s3503_s7, 3584, %s3509_s9, %s3511_s27, %s3357_s6, %s3357_s6, %s3358_s8  }
  0x5b   : > { %p3623_p11 = scmp.ne.s32.totalorder %s3620_s25, 0 }
  0x5c   : > { %s231_s10 = sand.u32 (!%p3623_p11), 1, %s3340_s19   ;;  %p3624_p13 = scmp.ne.s32.totalorder (!%p3623_p11), %s3619_s24, 0 }
  0x5d   : > { %229 = sbr.rel (%p3623_p11) target bundleno = 767 (0x2ff), region = 40  ;;  %s232_s12 = scalar_lea.sflag (!%p3623_p11), [#allocation3], %s231_s10 }
  0x5e   : > { %s2830_s11 = smul.u32 (!%p3623_p11), 224, %s231_s10 }
  0x60   : > { %s3542_s13 = scalar_lea.vmem (!%p3623_p11), [#allocation2], %s2830_s11 }
  0x64   : > { %3327 = dma.done.wait (%p3624_p13), %s232_s12, 3584  }
  0x65   : > { %3329 = vsyncadd (%p3624_p13), %s232_s12, 4294963712  ;;  %p3625_p3 = scmp.ne.s32.totalorder %s3618_s23, 0 }
  0x67   : > { %3331 = dma.done.wait (%p3625_p3), [#allocation5], 29184  }
  0x68   : > { %3333 = vsyncadd (%p3625_p3), [#allocation5], 4294938112  ;;  %v2898_v0 = vld [vmem:[#allocation4 + $0x4] ss:$16 sps:$4 sm:$0xff]   ;;  %v2900_v1 = vld [vmem:[#allocation4 + $0xc] ss:$16 sps:$4 sm:$0xff]  }
  0x69   : > { %1525 = vmatprep.subr.bf16.mxu0 %v2898_v0  ;;  %v2902_v2 = vld [vmem:[#allocation4] ss:$16 sps:$4 sm:$0xff]   ;;  %v2903_v3 = vld [vmem:[#allocation4 + $0x8] ss:$16 sps:$4 sm:$0xff]   ;;  %1737 = vmatprep.subr.bf16.mxu1 %v2900_v1  ;;  %v2904_v4 = vld [vmem:[#allocation4 + $0x24] ss:$16 sps:$4 sm:$0xff]  }
  0x6a   : > { %1526 = vmatpush1.bf16.msra.mxu0 %v2902_v2  ;;  %1738 = vmatpush1.bf16.msra.mxu1 %v2903_v3  ;;  %v2906_v5 = vld [vmem:[#allocation4 + $0x2c] ss:$16 sps:$4 sm:$0xff]   ;;  %v2908_v6 = vld [vmem:[#allocation4 + $0x20] ss:$16 sps:$4 sm:$0xff]   ;;  %v2909_v7 = vld [vmem:[#allocation4 + $0x28] ss:$16 sps:$4 sm:$0xff]  }
  0x6b   : > { %1527 = vmatprep.subr.bf16.mxu0 %v2904_v4  ;;  %1739 = vmatprep.subr.bf16.mxu1 %v2906_v5  ;;  %v2910_v8 = vld [vmem:[#allocation4 + $0x44] ss:$16 sps:$4 sm:$0xff]   ;;  %v2912_v9 = vld [vmem:[#allocation4 + $0x4c] ss:$16 sps:$4 sm:$0xff]   ;;  %v2914_v10 = vld [vmem:[#allocation4 + $0x40] ss:$16 sps:$4 sm:$0xff]  }
  0x6c   : > { %v2915_v11 = vld [vmem:[#allocation4 + $0x48] ss:$16 sps:$4 sm:$0xff]   ;;  %v2916_v12 = vld [vmem:[#allocation4 + $0x64] ss:$16 sps:$4 sm:$0xff]   ;;  %v2918_v13 = vld [vmem:[#allocation4 + $0x6c] ss:$16 sps:$4 sm:$0xff]  }
  0x6d   : > { %v2920_v14 = vld [vmem:[#allocation4 + $0x60] ss:$16 sps:$4 sm:$0xff]   ;;  %v2921_v15 = vld [vmem:[#allocation4 + $0x68] ss:$16 sps:$4 sm:$0xff]   ;;  %v2922_v16 = vld [vmem:[#allocation4 + $0x84] ss:$16 sps:$4 sm:$0xff]  }
  0x6e   : > { %1528 = vmatpush1.bf16.msra.mxu0 %v2908_v6  ;;  %1740 = vmatpush1.bf16.msra.mxu1 %v2909_v7  ;;  %v2924_v17 = vld [vmem:[#allocation4 + $0x8c] ss:$16 sps:$4 sm:$0xff]   ;;  %v2926_v18 = vld [vmem:[#allocation4 + $0x80] ss:$16 sps:$4 sm:$0xff]   ;;  %v2927_v19 = vld [vmem:[#allocation4 + $0x88] ss:$16 sps:$4 sm:$0xff]  }
  0x6f   : > { %1529 = vmatprep.subr.bf16.mxu0 %v2910_v8  ;;  %1741 = vmatprep.subr.bf16.mxu1 %v2912_v9  ;;  %v2928_v20 = vld [vmem:[#allocation4 + $0xa4] ss:$16 sps:$4 sm:$0xff]   ;;  %v2930_v21 = vld [vmem:[#allocation4 + $0xac] ss:$16 sps:$4 sm:$0xff]   ;;  %v2932_v22 = vld [vmem:[#allocation4 + $0xa0] ss:$16 sps:$4 sm:$0xff]  }
  0x70   : > { %v2933_v23 = vld [vmem:[#allocation4 + $0xa8] ss:$16 sps:$4 sm:$0xff]   ;;  %v2934_v24 = vld [vmem:[#allocation4 + $0xc4] ss:$16 sps:$4 sm:$0xff]   ;;  %v2936_v25 = vld [vmem:[#allocation4 + $0xcc] ss:$16 sps:$4 sm:$0xff]  }
  0x71   : > { %v2938_v26 = vld [vmem:[#allocation4 + $0xc0] ss:$16 sps:$4 sm:$0xff]   ;;  %v2939_v27 = vld [vmem:[#allocation4 + $0xc8] ss:$16 sps:$4 sm:$0xff]   ;;  %v2940_v28 = vld [vmem:[#allocation4 + $0xe4] ss:$16 sps:$4 sm:$0xff]  }
  0x72   : > { %1530 = vmatpush1.bf16.msra.mxu0 %v2914_v10  ;;  %1742 = vmatpush1.bf16.msra.mxu1 %v2915_v11  ;;  %v2942_v29 = vld [vmem:[#allocation4 + $0xec] ss:$16 sps:$4 sm:$0xff]   ;;  %v2944_v30 = vld [vmem:[#allocation4 + $0xe0] ss:$16 sps:$4 sm:$0xff]   ;;  %v2945_v31 = vld [vmem:[#allocation4 + $0xe8] ss:$16 sps:$4 sm:$0xff]  }
  0x73   : > { %1531 = vmatprep.subr.bf16.mxu0 %v2916_v12  ;;  %1743 = vmatprep.subr.bf16.mxu1 %v2918_v13  ;;  %v2946_v32 = vld [vmem:[#allocation4 + $0x104] ss:$16 sps:$4 sm:$0xff]   ;;  %v2948_v33 = vld [vmem:[#allocation4 + $0x10c] ss:$16 sps:$4 sm:$0xff]   ;;  %v2950_v34 = vld [vmem:[#allocation4 + $0x100] ss:$16 sps:$4 sm:$0xff]  }
  0x74   : > { %v2951_v35 = vld [vmem:[#allocation4 + $0x108] ss:$16 sps:$4 sm:$0xff]   ;;  %v2952_v36 = vld [vmem:[#allocation4 + $0x124] ss:$16 sps:$4 sm:$0xff]   ;;  %v2954_v37 = vld [vmem:[#allocation4 + $0x12c] ss:$16 sps:$4 sm:$0xff]  }
  0x75   : > { %v2956_v38 = vld [vmem:[#allocation4 + $0x120] ss:$16 sps:$4 sm:$0xff]   ;;  %v2957_v39 = vld [vmem:[#allocation4 + $0x128] ss:$16 sps:$4 sm:$0xff]   ;;  %v2958_v40 = vld [vmem:[#allocation4 + $0x144] ss:$16 sps:$4 sm:$0xff]  }
  0x76   : > { %1532 = vmatpush1.bf16.msra.mxu0 %v2920_v14  ;;  %1744 = vmatpush1.bf16.msra.mxu1 %v2921_v15  ;;  %v2960_v41 = vld [vmem:[#allocation4 + $0x14c] ss:$16 sps:$4 sm:$0xff]   ;;  %v2962_v42 = vld [vmem:[#allocation4 + $0x140] ss:$16 sps:$4 sm:$0xff]   ;;  %v2963_v43 = vld [vmem:[#allocation4 + $0x148] ss:$16 sps:$4 sm:$0xff]  }
  0x77   : > { %1533 = vmatprep.subr.bf16.mxu0 %v2922_v16  ;;  %1745 = vmatprep.subr.bf16.mxu1 %v2924_v17  ;;  %v2964_v44 = vld [vmem:[#allocation4 + $0x164] ss:$16 sps:$4 sm:$0xff]   ;;  %v2966_v45 = vld [vmem:[#allocation4 + $0x16c] ss:$16 sps:$4 sm:$0xff]   ;;  %v2968_v48 = vld [vmem:[#allocation4 + $0x160] ss:$16 sps:$4 sm:$0xff]  }
  0x78   : > { %v279_v46 = vld [vmem:[%s3542_s13 + $0x8] sm:$0xff]  ;;  %v286_v47 = vld [vmem:[%s3542_s13 + $0x40] sm:$0xff]  ;;  %v285_v5 = vld [vmem:[%s3542_s13 + $0x38] sm:$0xff]  ;;  %vm1518_vm0 = vcmask 130048   ;;  %s2452_s25 = sshll.u32 %s2440_s22, 2 }
  0x79   : > { %v2969_v49 = vld [vmem:[#allocation4 + $0x168] ss:$16 sps:$4 sm:$0xff]   ;;  %v307_v50 = vpack.c.bf16 %v286_v47, %v279_v46  ;;  %v2970_v51 = vld [vmem:[#allocation4 + $0x184] ss:$16 sps:$4 sm:$0xff]   ;;  %v2972_v52 = vld [vmem:[#allocation4 + $0x18c] ss:$16 sps:$4 sm:$0xff]  }
  0x7a   : > { %1534 = vmatpush1.bf16.msra.mxu0 %v2926_v18  ;;  %1746 = vmatpush1.bf16.msra.mxu1 %v2927_v19  ;;  %v2974_v53 = vld [vmem:[#allocation4 + $0x180] ss:$16 sps:$4 sm:$0xff]   ;;  %v2975_v54 = vld [vmem:[#allocation4 + $0x188] ss:$16 sps:$4 sm:$0xff]   ;;  %v2976_v55 = vld [vmem:[#allocation4 + $0x1a4] ss:$16 sps:$4 sm:$0xff]  }
  0x7b   : > { %1535 = vmatprep.subr.bf16.mxu0 %v2928_v20  ;;  %1747 = vmatprep.subr.bf16.mxu1 %v2930_v21  ;;  %v2978_v56 = vld [vmem:[#allocation4 + $0x1ac] ss:$16 sps:$4 sm:$0xff]   ;;  %v2980_v57 = vld [vmem:[#allocation4 + $0x1a0] ss:$16 sps:$4 sm:$0xff]   ;;  %v2981_v58 = vld [vmem:[#allocation4 + $0x1a8] ss:$16 sps:$4 sm:$0xff]  }
  0x7c   : > { %1557 = vmatprep.mubr.bf16.mxu0 %v307_v50  ;;  %1769 = vmatprep.mubr.bf16.mxu1 %v307_v50  ;;  %v2982_v59 = vld [vmem:[#allocation4 + $0x1c4] ss:$16 sps:$4 sm:$0xff]   ;;  %v2984_v60 = vld [vmem:[#allocation4 + $0x1cc] ss:$16 sps:$4 sm:$0xff]   ;;  %v2986_v61 = vld [vmem:[#allocation4 + $0x1c0] ss:$16 sps:$4 sm:$0xff]  }
  0x7d   : > { %v2987_v62 = vld [vmem:[#allocation4 + $0x1c8] ss:$16 sps:$4 sm:$0xff]   ;;  %v2988_v63 = vld [vmem:[#allocation4 + $0x1e4] ss:$16 sps:$4 sm:$0xff]   ;;  %v2990_v0 = vld [vmem:[#allocation4 + $0x1ec] ss:$16 sps:$4 sm:$0xff]  }
  0x7e   : > { %1536 = vmatpush1.bf16.msra.mxu0 %v2932_v22  ;;  %1748 = vmatpush1.bf16.msra.mxu1 %v2933_v23  ;;  %v2992_v1 = vld [vmem:[#allocation4 + $0x1e0] ss:$16 sps:$4 sm:$0xff]   ;;  %v2993_v2 = vld [vmem:[#allocation4 + $0x1e8] ss:$16 sps:$4 sm:$0xff]   ;;  %v2996_v3 = vld [vmem:[#allocation4 + $0x204] ss:$16 sps:$4 sm:$0xff]  }
  0x7f   : > { %1537 = vmatprep.subr.bf16.mxu0 %v2934_v24  ;;  %1749 = vmatprep.subr.bf16.mxu1 %v2936_v25  ;;  %v278_v4 = vld [vmem:[%s3542_s13] sm:$0xff]  ;;  %v2999_v6 = vld [vmem:[#allocation4 + $0x20c] ss:$16 sps:$4 sm:$0xff]   ;;  %v2997_v8 = vld [vmem:[#allocation4 + $0x208] ss:$16 sps:$4 sm:$0xff]   ;;  %p272_p7 = scmp.lt.s32.totalorder %s2452_s25, 7 }
  0x80   : > { %v2994_v7 = vld [vmem:[#allocation4 + $0x200] ss:$16 sps:$4 sm:$0xff]   ;;  %v306_v9 = vpack.c.bf16 %v285_v5, %v278_v4  ;;  %v3002_v10 = vld [vmem:[#allocation4 + $0x224] ss:$16 sps:$4 sm:$0xff]   ;;  %v3005_v11 = vld [vmem:[#allocation4 + $0x22c] ss:$16 sps:$4 sm:$0xff]  }
  0x81   : > { %v3000_v12 = vld [vmem:[#allocation4 + $0x220] ss:$16 sps:$4 sm:$0xff]   ;;  %v3003_v13 = vld [vmem:[#allocation4 + $0x228] ss:$16 sps:$4 sm:$0xff]   ;;  %v3008_v14 = vld [vmem:[#allocation4 + $0x244] ss:$16 sps:$4 sm:$0xff]  }
  0x82   : > { %1538 = vmatpush1.bf16.msra.mxu0 %v2938_v26  ;;  %1750 = vmatpush1.bf16.msra.mxu1 %v2939_v27  ;;  %v3011_v15 = vld [vmem:[#allocation4 + $0x24c] ss:$16 sps:$4 sm:$0xff]   ;;  %v3006_v16 = vld [vmem:[#allocation4 + $0x240] ss:$16 sps:$4 sm:$0xff]   ;;  %v3009_v17 = vld [vmem:[#allocation4 + $0x248] ss:$16 sps:$4 sm:$0xff]  }
  0x83   : > { %1539 = vmatprep.subr.bf16.mxu0 %v2940_v28  ;;  %1751 = vmatprep.subr.bf16.mxu1 %v2942_v29  ;;  %v3014_v18 = vld [vmem:[#allocation4 + $0x264] ss:$16 sps:$4 sm:$0xff]   ;;  %v3017_v19 = vld [vmem:[#allocation4 + $0x26c] ss:$16 sps:$4 sm:$0xff]   ;;  %v3012_v20 = vld [vmem:[#allocation4 + $0x260] ss:$16 sps:$4 sm:$0xff]  }
  0x84   : > { %v3015_v21 = vld [vmem:[#allocation4 + $0x268] ss:$16 sps:$4 sm:$0xff]   ;;  %v3020_v22 = vld [vmem:[#allocation4 + $0x284] ss:$16 sps:$4 sm:$0xff]   ;;  %v3023_v23 = vld [vmem:[#allocation4 + $0x28c] ss:$16 sps:$4 sm:$0xff]  }
  0x85   : > { %v3018_v24 = vld [vmem:[#allocation4 + $0x280] ss:$16 sps:$4 sm:$0xff]   ;;  %v3021_v25 = vld [vmem:[#allocation4 + $0x288] ss:$16 sps:$4 sm:$0xff]   ;;  %v3026_v26 = vld [vmem:[#allocation4 + $0x2a4] ss:$16 sps:$4 sm:$0xff]  }
  0x86   : > { %1540 = vmatpush1.bf16.msra.mxu0 %v2944_v30  ;;  %1752 = vmatpush1.bf16.msra.mxu1 %v2945_v31  ;;  %v3029_v27 = vld [vmem:[#allocation4 + $0x2ac] ss:$16 sps:$4 sm:$0xff]   ;;  %v300_v29 = vld [vmem:[%s3542_s13 + $0xb0] sm:$0xff]  ;;  %v3039_v46 = vld [vmem:[#allocation4 + $0x2e8] ss:$16 sps:$4 sm:$0xff]   ;;  %s3631_s25 = smov (!%p272_p7, %s2452_s25), 7 }
  0x87   : > { %1541 = vmatprep.subr.bf16.mxu0 %v2946_v32  ;;  %1753 = vmatprep.subr.bf16.mxu1 %v2948_v33  ;;  %v293_v28 = vld [vmem:[%s3542_s13 + $0x78] sm:$0xff]  ;;  %v3024_v30 = vld [vmem:[#allocation4 + $0x2a0] ss:$16 sps:$4 sm:$0xff]   ;;  %v3032_v33 = vld [vmem:[#allocation4 + $0x2c4] ss:$16 sps:$4 sm:$0xff]   ;;  %s2453_s21 = sshll.u32 %s3631_s25, 2 }
  0x88   : > { %v314_v31 = vpack.c.bf16 %v300_v29, %v293_v28  ;;  %v3027_v32 = vld [vmem:[#allocation4 + $0x2a8] ss:$16 sps:$4 sm:$0xff]   ;;  %v3044_v47 = vld [vmem:[#allocation4 + $0x304] ss:$16 sps:$4 sm:$0xff]   ;;  %v3077_v4 = vld [vmem:[#allocation4 + $0x3ac] ss:$16 sps:$4 sm:$0xff]   ;;  %s275_s27 = scalar_lea.vmem %s3613_s5, %s2453_s21 }
  0x89   : > { %v3045_v50 = vld [vmem:[#allocation4 + $0x308] ss:$16 sps:$4 sm:$0xff]   ;;  %v3072_v5 = vld [vmem:[#allocation4 + $0x3a0] ss:$16 sps:$4 sm:$0xff]  }
  0x8a   : > { %1542 = vmatpush1.bf16.msra.mxu0 %v2950_v34  ;;  %1754 = vmatpush1.bf16.msra.mxu1 %v2951_v35  ;;  %v3035_v34 = vld [vmem:[#allocation4 + $0x2cc] ss:$16 sps:$4 sm:$0xff]   ;;  %v292_v35 = vld [vmem:[%s3542_s13 + $0x70] sm:$0xff]  ;;  %v3099_v28 = vld [vmem:[#allocation4 + $0x428] ss:$16 sps:$4 sm:$0xff]  }
  0x8b   : > { %1543 = vmatprep.subr.bf16.mxu0 %v2952_v36  ;;  %1755 = vmatprep.subr.bf16.mxu1 %v2954_v37  ;;  %v299_v36 = vld [vmem:[%s3542_s13 + $0xa8] sm:$0xff]  ;;  %v294_v29 = vld [vmem:[%s3542_s13 + $0x80] sm:$0xff] }
  0x8c   : > { %v313_v37 = vpack.c.bf16 %v299_v36, %v292_v35  ;;  %v283_v35 = vld [vmem:[%s3542_s13 + $0x28] sm:$0xff]  ;;  %v290_v36 = vld [vmem:[%s3542_s13 + $0x60] sm:$0xff] }
  0x8e   : > { %1544 = vmatpush1.bf16.msra.mxu0 %v2956_v38  ;;  %1756 = vmatpush1.bf16.msra.mxu1 %v2957_v39  ;;  %v3030_v38 = vld [vmem:[#allocation4 + $0x2c0] ss:$16 sps:$4 sm:$0xff]   ;;  %v3033_v39 = vld [vmem:[#allocation4 + $0x2c8] ss:$16 sps:$4 sm:$0xff]  }
  0x8f   : > { %1545 = vmatprep.subr.bf16.mxu0 %v2958_v40  ;;  %1757 = vmatprep.subr.bf16.mxu1 %v2960_v41  ;;  %v281_v40 = vld [vmem:[%s3542_s13 + $0x18] sm:$0xff]  ;;  %v288_v41 = vld [vmem:[%s3542_s13 + $0x50] sm:$0xff] }
  0x92   : > { %1546 = vmatpush1.bf16.msra.mxu0 %v2962_v42  ;;  %1758 = vmatpush1.bf16.msra.mxu1 %v2963_v43  ;;  %v3038_v42 = vld [vmem:[#allocation4 + $0x2e4] ss:$16 sps:$4 sm:$0xff]   ;;  %v3041_v43 = vld [vmem:[#allocation4 + $0x2ec] ss:$16 sps:$4 sm:$0xff]  }
  0x93   : > { %1547 = vmatprep.subr.bf16.mxu0 %v2964_v44  ;;  %1759 = vmatprep.subr.bf16.mxu1 %v2966_v45  ;;  %v309_v44 = vpack.c.bf16 %v288_v41, %v281_v40  ;;  %v3036_v45 = vld [vmem:[#allocation4 + $0x2e0] ss:$16 sps:$4 sm:$0xff]   ;;  %v311_v40 = vpack.c.bf16 %v290_v36, %v283_v35  ;;  %v3189_v35 = vld [vmem:[#allocation4 + $0x608] ss:$16 sps:$4 sm:$0xff]  }
  0x94   : > { %v3108_v41 = vld [vmem:[#allocation4 + $0x460] ss:$16 sps:$4 sm:$0xff]  }
  0x96   : > { %1548 = vmatpush1.bf16.msra.mxu0 %v2968_v48  ;;  %1760 = vmatpush1.bf16.msra.mxu1 %v2969_v49  ;;  %v3047_v48 = vld [vmem:[#allocation4 + $0x30c] ss:$16 sps:$4 sm:$0xff]   ;;  %v3042_v49 = vld [vmem:[#allocation4 + $0x300] ss:$16 sps:$4 sm:$0xff]  }
  0x97   : > { %1549 = vmatprep.subr.bf16.mxu0 %v2970_v51  ;;  %1761 = vmatprep.subr.bf16.mxu1 %v2972_v52  ;;  %v3050_v51 = vld [vmem:[#allocation4 + $0x324] ss:$16 sps:$4 sm:$0xff]   ;;  %v3053_v52 = vld [vmem:[#allocation4 + $0x32c] ss:$16 sps:$4 sm:$0xff]  }
  0x9a   : > { %1550 = vmatpush1.bf16.msra.mxu0 %v2974_v53  ;;  %1762 = vmatpush1.bf16.msra.mxu1 %v2975_v54  ;;  %v3048_v53 = vld [vmem:[#allocation4 + $0x320] ss:$16 sps:$4 sm:$0xff]   ;;  %v3051_v54 = vld [vmem:[#allocation4 + $0x328] ss:$16 sps:$4 sm:$0xff]  }
  0x9b   : > { %1551 = vmatprep.subr.bf16.mxu0 %v2976_v55  ;;  %1763 = vmatprep.subr.bf16.mxu1 %v2978_v56  ;;  %v3056_v55 = vld [vmem:[#allocation4 + $0x344] ss:$16 sps:$4 sm:$0xff]   ;;  %v3059_v56 = vld [vmem:[#allocation4 + $0x34c] ss:$16 sps:$4 sm:$0xff]  }
  0x9e   : > { %1552 = vmatpush1.bf16.msra.mxu0 %v2980_v57  ;;  %1764 = vmatpush1.bf16.msra.mxu1 %v2981_v58  ;;  %v3054_v57 = vld [vmem:[#allocation4 + $0x340] ss:$16 sps:$4 sm:$0xff]   ;;  %v3057_v58 = vld [vmem:[#allocation4 + $0x348] ss:$16 sps:$4 sm:$0xff]  }
  0x9f   : > { %1553 = vmatprep.subr.bf16.mxu0 %v2982_v59  ;;  %1765 = vmatprep.subr.bf16.mxu1 %v2984_v60  ;;  %v3062_v59 = vld [vmem:[#allocation4 + $0x364] ss:$16 sps:$4 sm:$0xff]   ;;  %v3065_v60 = vld [vmem:[#allocation4 + $0x36c] ss:$16 sps:$4 sm:$0xff]  }
  0xa2   : > { %1554 = vmatpush1.bf16.msra.mxu0 %v2986_v61  ;;  %1766 = vmatpush1.bf16.msra.mxu1 %v2987_v62  ;;  %v3060_v61 = vld [vmem:[#allocation4 + $0x360] ss:$16 sps:$4 sm:$0xff]   ;;  %v3063_v62 = vld [vmem:[#allocation4 + $0x368] ss:$16 sps:$4 sm:$0xff]  }
  0xa3   : > { %1555 = vmatprep.subr.bf16.mxu0 %v2988_v63  ;;  %1767 = vmatprep.subr.bf16.mxu1 %v2990_v0  ;;  %v3068_v63 = vld [vmem:[#allocation4 + $0x384] ss:$16 sps:$4 sm:$0xff]   ;;  %v3071_v0 = vld [vmem:[#allocation4 + $0x38c] ss:$16 sps:$4 sm:$0xff]  }
  0xa6   : > { %1556 = vmatpush1.bf16.msra.mxu0 %v2992_v1  ;;  %1768 = vmatpush1.bf16.msra.mxu1 %v2993_v2  ;;  %v3066_v1 = vld [vmem:[#allocation4 + $0x380] ss:$16 sps:$4 sm:$0xff]   ;;  %v3069_v2 = vld [vmem:[#allocation4 + $0x388] ss:$16 sps:$4 sm:$0xff]  }
  0xa7   : > { %1578 = vmatprep.subr.bf16.mxu0 %v2996_v3  ;;  %1790 = vmatprep.subr.bf16.mxu1 %v2999_v6  ;;  %v3074_v3 = vld [vmem:[#allocation4 + $0x3a4] ss:$16 sps:$4 sm:$0xff]   ;;  %v3075_v6 = vld [vmem:[#allocation4 + $0x3a8] ss:$16 sps:$4 sm:$0xff]  }
  0xa9   : > { %1558 = vmatmul.mubr.bf16.vlgmr.msra.gmra.mrb[0].mxu0 %v306_v9  ;;  %1770 = vmatmul.mubr.bf16.vlgmr.msra.gmra.mrb[0].mxu1 %v306_v9  ;;  %v3078_v9 = vld [vmem:[#allocation4 + $0x3c0] ss:$16 sps:$4 sm:$0xff]  }
  0xaa   : > { %1579 = vmatpush1.bf16.msra.mxu0 %v2994_v7  ;;  %1791 = vmatpush1.bf16.msra.mxu1 %v2997_v8  ;;  %v3080_v7 = vld [vmem:[#allocation4 + $0x3c4] ss:$16 sps:$4 sm:$0xff]   ;;  %v3083_v8 = vld [vmem:[#allocation4 + $0x3cc] ss:$16 sps:$4 sm:$0xff]  }
  0xab   : > { %1580 = vmatprep.subr.bf16.mxu0 %v3002_v10  ;;  %1792 = vmatprep.subr.bf16.mxu1 %v3005_v11  ;;  %v3081_v10 = vld [vmem:[#allocation4 + $0x3c8] ss:$16 sps:$4 sm:$0xff]   ;;  %v3086_v11 = vld [vmem:[#allocation4 + $0x3e4] ss:$16 sps:$4 sm:$0xff]  }
  0xac   : > { %1567 = vmatprep.mubr.bf16.mxu0 %v314_v31  ;;  %1779 = vmatprep.mubr.bf16.mxu1 %v314_v31  ;;  %v3104_v31 = vld [vmem:[#allocation4 + $0x444] ss:$16 sps:$4 sm:$0xff]  }
  0xae   : > { %1581 = vmatpush1.bf16.msra.mxu0 %v3000_v12  ;;  %1793 = vmatpush1.bf16.msra.mxu1 %v3003_v13  ;;  %v3089_v12 = vld [vmem:[#allocation4 + $0x3ec] ss:$16 sps:$4 sm:$0xff]   ;;  %v3084_v13 = vld [vmem:[#allocation4 + $0x3e0] ss:$16 sps:$4 sm:$0xff]  }
  0xaf   : > { %1582 = vmatprep.subr.bf16.mxu0 %v3008_v14  ;;  %1794 = vmatprep.subr.bf16.mxu1 %v3011_v15  ;;  %v3087_v14 = vld [vmem:[#allocation4 + $0x3e8] ss:$16 sps:$4 sm:$0xff]   ;;  %v3092_v15 = vld [vmem:[#allocation4 + $0x404] ss:$16 sps:$4 sm:$0xff]  }
  0xb1   : > { %1568 = vmatmul.mubr.bf16.gmra.mrb[4].mxu0 %v313_v37  ;;  %1780 = vmatmul.mubr.bf16.gmra.mrb[4].mxu1 %v313_v37  ;;  %v3105_v37 = vld [vmem:[#allocation4 + $0x448] ss:$16 sps:$4 sm:$0xff]  }
  0xb2   : > { %1583 = vmatpush1.bf16.msra.mxu0 %v3006_v16  ;;  %1795 = vmatpush1.bf16.msra.mxu1 %v3009_v17  ;;  %v280_v16 = vld [vmem:[%s3542_s13 + $0x10] sm:$0xff]  ;;  %v287_v17 = vld [vmem:[%s3542_s13 + $0x48] sm:$0xff] }
  0xb3   : > { %1584 = vmatprep.subr.bf16.mxu0 %v3014_v18  ;;  %1796 = vmatprep.subr.bf16.mxu1 %v3017_v19  ;;  %v3095_v18 = vld [vmem:[#allocation4 + $0x40c] ss:$16 sps:$4 sm:$0xff]   ;;  %v3090_v19 = vld [vmem:[#allocation4 + $0x400] ss:$16 sps:$4 sm:$0xff]  }
  0xb4   : > { %1610 = vmatprep.mubr.bf16.mxu0 %v309_v44  ;;  %1822 = vmatprep.mubr.bf16.mxu1 %v309_v44  ;;  %v3119_v44 = vld [vmem:[#allocation4 + $0x48c] ss:$16 sps:$4 sm:$0xff]  }
  0xb6   : > { %1585 = vmatpush1.bf16.msra.mxu0 %v3012_v20  ;;  %1797 = vmatpush1.bf16.msra.mxu1 %v3015_v21  ;;  %v3093_v20 = vld [vmem:[#allocation4 + $0x408] ss:$16 sps:$4 sm:$0xff]   ;;  %v308_v21 = vpack.c.bf16 %v287_v17, %v280_v16  ;;  %v3173_v16 = vld [vmem:[#allocation4 + $0x5ac] ss:$16 sps:$4 sm:$0xff]   ;;  %v3168_v17 = vld [vmem:[#allocation4 + $0x5a0] ss:$16 sps:$4 sm:$0xff]  }
  0xb7   : > { %1586 = vmatprep.subr.bf16.mxu0 %v3020_v22  ;;  %1798 = vmatprep.subr.bf16.mxu1 %v3023_v23  ;;  %v295_v22 = vld [vmem:[%s3542_s13 + $0x88] sm:$0xff]  ;;  %v302_v23 = vld [vmem:[%s3542_s13 + $0xc0] sm:$0xff] }
  0xba   : > { %1587 = vmatpush1.bf16.msra.mxu0 %v3018_v24  ;;  %1799 = vmatpush1.bf16.msra.mxu1 %v3021_v25  ;;  %v3098_v24 = vld [vmem:[#allocation4 + $0x424] ss:$16 sps:$4 sm:$0xff]   ;;  %v3101_v25 = vld [vmem:[#allocation4 + $0x42c] ss:$16 sps:$4 sm:$0xff]  }
  0xbb   : > { %1588 = vmatprep.subr.bf16.mxu0 %v3026_v26  ;;  %1800 = vmatprep.subr.bf16.mxu1 %v3029_v27  ;;  %v3096_v26 = vld [vmem:[#allocation4 + $0x420] ss:$16 sps:$4 sm:$0xff]   ;;  %v316_v27 = vpack.c.bf16 %v302_v23, %v295_v22  ;;  %v3177_v22 = vld [vmem:[#allocation4 + $0x5c8] ss:$16 sps:$4 sm:$0xff]   ;;  %v3182_v23 = vld [vmem:[#allocation4 + $0x5e4] ss:$16 sps:$4 sm:$0xff]  }
  0xbe   : > { %1589 = vmatpush1.bf16.msra.mxu0 %v3024_v30  ;;  %1801 = vmatpush1.bf16.msra.mxu1 %v3027_v32  ;;  %v301_v30 = vld [vmem:[%s3542_s13 + $0xb8] sm:$0xff] }
  0xbf   : > { %1590 = vmatprep.subr.bf16.mxu0 %v3032_v33  ;;  %1802 = vmatprep.subr.bf16.mxu1 %v3035_v34  ;;  %v3107_v32 = vld [vmem:[#allocation4 + $0x44c] ss:$16 sps:$4 sm:$0xff]   ;;  %v3102_v33 = vld [vmem:[#allocation4 + $0x440] ss:$16 sps:$4 sm:$0xff]   ;;  %v315_v34 = vpack.c.bf16 %v301_v30, %v294_v29  ;;  %v3188_v29 = vld [vmem:[#allocation4 + $0x604] ss:$16 sps:$4 sm:$0xff]  }
  0xc0   : > { %v3191_v30 = vld [vmem:[#allocation4 + $0x60c] ss:$16 sps:$4 sm:$0xff]  }
  0xc2   : > { %1591 = vmatpush1.bf16.msra.mxu0 %v3030_v38  ;;  %1803 = vmatpush1.bf16.msra.mxu1 %v3033_v39  ;;  %v3110_v38 = vld [vmem:[#allocation4 + $0x464] ss:$16 sps:$4 sm:$0xff]   ;;  %v3113_v39 = vld [vmem:[#allocation4 + $0x46c] ss:$16 sps:$4 sm:$0xff]  }
  0xc3   : > { %1592 = vmatprep.subr.bf16.mxu0 %v3038_v42  ;;  %1804 = vmatprep.subr.bf16.mxu1 %v3041_v43  ;;  %v3111_v42 = vld [vmem:[#allocation4 + $0x468] ss:$16 sps:$4 sm:$0xff]   ;;  %v3116_v43 = vld [vmem:[#allocation4 + $0x484] ss:$16 sps:$4 sm:$0xff]  }
  0xc6   : > { %1593 = vmatpush1.bf16.msra.mxu0 %v3036_v45  ;;  %1805 = vmatpush1.bf16.msra.mxu1 %v3039_v46  ;;  %v3114_v45 = vld [vmem:[#allocation4 + $0x480] ss:$16 sps:$4 sm:$0xff]   ;;  %v3117_v46 = vld [vmem:[#allocation4 + $0x488] ss:$16 sps:$4 sm:$0xff]  }
  0xc7   : > { %1594 = vmatprep.subr.bf16.mxu0 %v3044_v47  ;;  %1806 = vmatprep.subr.bf16.mxu1 %v3047_v48  ;;  %v3122_v47 = vld [vmem:[#allocation4 + $0x4a4] ss:$16 sps:$4 sm:$0xff]   ;;  %v3125_v48 = vld [vmem:[#allocation4 + $0x4ac] ss:$16 sps:$4 sm:$0xff]  }
  0xca   : > { %1595 = vmatpush1.bf16.msra.mxu0 %v3042_v49  ;;  %1807 = vmatpush1.bf16.msra.mxu1 %v3045_v50  ;;  %v3120_v49 = vld [vmem:[#allocation4 + $0x4a0] ss:$16 sps:$4 sm:$0xff]   ;;  %v3123_v50 = vld [vmem:[#allocation4 + $0x4a8] ss:$16 sps:$4 sm:$0xff]  }
  0xcb   : > { %1596 = vmatprep.subr.bf16.mxu0 %v3050_v51  ;;  %1808 = vmatprep.subr.bf16.mxu1 %v3053_v52  ;;  %v3128_v51 = vld [vmem:[#allocation4 + $0x4c4] ss:$16 sps:$4 sm:$0xff]   ;;  %v3131_v52 = vld [vmem:[#allocation4 + $0x4cc] ss:$16 sps:$4 sm:$0xff]  }
  0xce   : > { %1597 = vmatpush1.bf16.msra.mxu0 %v3048_v53  ;;  %1809 = vmatpush1.bf16.msra.mxu1 %v3051_v54  ;;  %v3126_v53 = vld [vmem:[#allocation4 + $0x4c0] ss:$16 sps:$4 sm:$0xff]   ;;  %v3129_v54 = vld [vmem:[#allocation4 + $0x4c8] ss:$16 sps:$4 sm:$0xff]  }
  0xcf   : > { %1598 = vmatprep.subr.bf16.mxu0 %v3056_v55  ;;  %1810 = vmatprep.subr.bf16.mxu1 %v3059_v56  ;;  %v3134_v55 = vld [vmem:[#allocation4 + $0x4e4] ss:$16 sps:$4 sm:$0xff]   ;;  %v3137_v56 = vld [vmem:[#allocation4 + $0x4ec] ss:$16 sps:$4 sm:$0xff]  }
  0xd2   : > { %1599 = vmatpush1.bf16.msra.mxu0 %v3054_v57  ;;  %1811 = vmatpush1.bf16.msra.mxu1 %v3057_v58  ;;  %v3132_v57 = vld [vmem:[#allocation4 + $0x4e0] ss:$16 sps:$4 sm:$0xff]   ;;  %v3135_v58 = vld [vmem:[#allocation4 + $0x4e8] ss:$16 sps:$4 sm:$0xff]  }
  0xd3   : > { %1600 = vmatprep.subr.bf16.mxu0 %v3062_v59  ;;  %1812 = vmatprep.subr.bf16.mxu1 %v3065_v60  ;;  %v3140_v59 = vld [vmem:[#allocation4 + $0x504] ss:$16 sps:$4 sm:$0xff]   ;;  %v3143_v60 = vld [vmem:[#allocation4 + $0x50c] ss:$16 sps:$4 sm:$0xff]  }
  0xd6   : > { %1601 = vmatpush1.bf16.msra.mxu0 %v3060_v61  ;;  %1813 = vmatpush1.bf16.msra.mxu1 %v3063_v62  ;;  %v3138_v61 = vld [vmem:[#allocation4 + $0x500] ss:$16 sps:$4 sm:$0xff]   ;;  %v3141_v62 = vld [vmem:[#allocation4 + $0x508] ss:$16 sps:$4 sm:$0xff]  }
  0xd7   : > { %1602 = vmatprep.subr.bf16.mxu0 %v3068_v63  ;;  %1814 = vmatprep.subr.bf16.mxu1 %v3071_v0  ;;  %v3146_v63 = vld [vmem:[#allocation4 + $0x524] ss:$16 sps:$4 sm:$0xff]   ;;  %v3149_v0 = vld [vmem:[#allocation4 + $0x52c] ss:$16 sps:$4 sm:$0xff]  }
  0xda   : > { %1603 = vmatpush1.bf16.msra.mxu0 %v3066_v1  ;;  %1815 = vmatpush1.bf16.msra.mxu1 %v3069_v2  ;;  %v3144_v1 = vld [vmem:[#allocation4 + $0x520] ss:$16 sps:$4 sm:$0xff]   ;;  %v3147_v2 = vld [vmem:[#allocation4 + $0x528] ss:$16 sps:$4 sm:$0xff]  }
  0xdb   : > { %1604 = vmatprep.subr.bf16.mxu0 %v3074_v3  ;;  %1816 = vmatprep.subr.bf16.mxu1 %v3077_v4  ;;  %v3152_v3 = vld [vmem:[#allocation4 + $0x544] ss:$16 sps:$4 sm:$0xff]   ;;  %v3155_v4 = vld [vmem:[#allocation4 + $0x54c] ss:$16 sps:$4 sm:$0xff]  }
  0xde   : > { %1605 = vmatpush1.bf16.msra.mxu0 %v3072_v5  ;;  %1817 = vmatpush1.bf16.msra.mxu1 %v3075_v6  ;;  %v3150_v5 = vld [vmem:[#allocation4 + $0x540] ss:$16 sps:$4 sm:$0xff]   ;;  %v3153_v6 = vld [vmem:[#allocation4 + $0x548] ss:$16 sps:$4 sm:$0xff]  }
  0xdf   : > { %1606 = vmatprep.subr.bf16.mxu0 %v3080_v7  ;;  %1818 = vmatprep.subr.bf16.mxu1 %v3083_v8  ;;  %v3158_v7 = vld [vmem:[#allocation4 + $0x564] ss:$16 sps:$4 sm:$0xff]   ;;  %v3161_v8 = vld [vmem:[#allocation4 + $0x56c] ss:$16 sps:$4 sm:$0xff]  }
  0xe2   : > { %1607 = vmatpush1.bf16.msra.mxu0 %v3078_v9  ;;  %1819 = vmatpush1.bf16.msra.mxu1 %v3081_v10  ;;  %v3156_v9 = vld [vmem:[#allocation4 + $0x560] ss:$16 sps:$4 sm:$0xff]   ;;  %v3159_v10 = vld [vmem:[#allocation4 + $0x568] ss:$16 sps:$4 sm:$0xff]  }
  0xe3   : > { %1608 = vmatprep.subr.bf16.mxu0 %v3086_v11  ;;  %1820 = vmatprep.subr.bf16.mxu1 %v3089_v12  ;;  %v3164_v11 = vld [vmem:[#allocation4 + $0x584] ss:$16 sps:$4 sm:$0xff]   ;;  %v3167_v12 = vld [vmem:[#allocation4 + $0x58c] ss:$16 sps:$4 sm:$0xff]  }
  0xe6   : > { %1609 = vmatpush1.bf16.msra.mxu0 %v3084_v13  ;;  %1821 = vmatpush1.bf16.msra.mxu1 %v3087_v14  ;;  %v3162_v13 = vld [vmem:[#allocation4 + $0x580] ss:$16 sps:$4 sm:$0xff]   ;;  %v3165_v14 = vld [vmem:[#allocation4 + $0x588] ss:$16 sps:$4 sm:$0xff]  }
  0xe7   : > { %1631 = vmatprep.subr.bf16.mxu0 %v3092_v15  ;;  %1843 = vmatprep.subr.bf16.mxu1 %v3095_v18  ;;  %v3170_v15 = vld [vmem:[#allocation4 + $0x5a4] ss:$16 sps:$4 sm:$0xff]   ;;  %v3171_v18 = vld [vmem:[#allocation4 + $0x5a8] ss:$16 sps:$4 sm:$0xff]  }
  0xe9   : > { %1611 = vmatmul.mubr.bf16.vlgmr.msra.gmra.mrb[0].mxu0 %v308_v21  ;;  %1823 = vmatmul.mubr.bf16.vlgmr.msra.gmra.mrb[0].mxu1 %v308_v21  ;;  %v3174_v21 = vld [vmem:[#allocation4 + $0x5c0] ss:$16 sps:$4 sm:$0xff]  }
  0xea   : > { %1632 = vmatpush1.bf16.msra.mxu0 %v3090_v19  ;;  %1844 = vmatpush1.bf16.msra.mxu1 %v3093_v20  ;;  %v3176_v19 = vld [vmem:[#allocation4 + $0x5c4] ss:$16 sps:$4 sm:$0xff]   ;;  %v3179_v20 = vld [vmem:[#allocation4 + $0x5cc] ss:$16 sps:$4 sm:$0xff]  }
  0xeb   : > { %1633 = vmatprep.subr.bf16.mxu0 %v3098_v24  ;;  %1845 = vmatprep.subr.bf16.mxu1 %v3101_v25  ;;  %v3185_v24 = vld [vmem:[#allocation4 + $0x5ec] ss:$16 sps:$4 sm:$0xff]   ;;  %v3180_v25 = vld [vmem:[#allocation4 + $0x5e0] ss:$16 sps:$4 sm:$0xff]  }
  0xec   : > { %1620 = vmatprep.mubr.bf16.mxu0 %v316_v27  ;;  %1832 = vmatprep.mubr.bf16.mxu1 %v316_v27  ;;  %v282_v27 = vld [vmem:[%s3542_s13 + $0x20] sm:$0xff] }
  0xee   : > { %1634 = vmatpush1.bf16.msra.mxu0 %v3096_v26  ;;  %1846 = vmatpush1.bf16.msra.mxu1 %v3099_v28  ;;  %v3183_v26 = vld [vmem:[#allocation4 + $0x5e8] ss:$16 sps:$4 sm:$0xff]  }
  0xef   : > { %1635 = vmatprep.subr.bf16.mxu0 %v3104_v31  ;;  %1847 = vmatprep.subr.bf16.mxu1 %v3107_v32  ;;  %v289_v28 = vld [vmem:[%s3542_s13 + $0x58] sm:$0xff]  ;;  %v304_v32 = vld [vmem:[%s3542_s13 + $0xd0] sm:$0xff] }
  0xf0   : > { %v297_v31 = vld [vmem:[%s3542_s13 + $0x98] sm:$0xff] }
  0xf1   : > { %1621 = vmatmul.mubr.bf16.gmra.mrb[4].mxu0 %v315_v34  ;;  %1833 = vmatmul.mubr.bf16.gmra.mrb[4].mxu1 %v315_v34  ;;  %v3186_v34 = vld [vmem:[#allocation4 + $0x600] ss:$16 sps:$4 sm:$0xff]   ;;  %v318_v36 = vpack.c.bf16 %v304_v32, %v297_v31 }
  0xf2   : > { %1636 = vmatpush1.bf16.msra.mxu0 %v3102_v33  ;;  %1848 = vmatpush1.bf16.msra.mxu1 %v3105_v37  ;;  %v310_v33 = vpack.c.bf16 %v289_v28, %v282_v27  ;;  %v3192_v37 = vld [vmem:[#allocation6 + $0x40] sm:$0xff]  }
  0xf3   : > { %1637 = vmatprep.subr.bf16.mxu0 %v3110_v38  ;;  %1849 = vmatprep.subr.bf16.mxu1 %v3113_v39  ;;  %v3193_v38 = vld [vmem:[#allocation6 + $0xc0] sm:$0xff]   ;;  %v296_v39 = vld [vmem:[%s3542_s13 + $0x90] sm:$0xff] }
  0xf4   : > { %1663 = vmatprep.mubr.bf16.mxu0 %v311_v40  ;;  %1875 = vmatprep.mubr.bf16.mxu1 %v311_v40  ;;  %v303_v40 = vld [vmem:[%s3542_s13 + $0xc8] sm:$0xff] }
  0xf6   : > { %1638 = vmatpush1.bf16.msra.mxu0 %v3108_v41  ;;  %1850 = vmatpush1.bf16.msra.mxu1 %v3111_v42  ;;  %v317_v41 = vpack.c.bf16 %v303_v40, %v296_v39  ;;  %v3359_v42 = vmov 0  }
  0xf7   : > { %1639 = vmatprep.subr.bf16.mxu0 %v3116_v43  ;;  %1851 = vmatprep.subr.bf16.mxu1 %v3119_v44  ;;  %v284_v43 = vld [vmem:[%s3542_s13 + $0x30] sm:$0xff]  ;;  %v291_v44 = vld [vmem:[%s3542_s13 + $0x68] sm:$0xff] }
  0xfa   : > { %1640 = vmatpush1.bf16.msra.mxu0 %v3114_v45  ;;  %1852 = vmatpush1.bf16.msra.mxu1 %v3117_v46  ;;  %v312_v45 = vpack.c.bf16 %v291_v44, %v284_v43  ;;  %v3194_v46 = vld [vmem:[#allocation6] sm:$0xff]  }
  0xfb   : > { %1641 = vmatprep.subr.bf16.mxu0 %v3122_v47  ;;  %1853 = vmatprep.subr.bf16.mxu1 %v3125_v48  ;;  %v3195_v47 = vld [vmem:[#allocation6 + $0x80] sm:$0xff]   ;;  %v3196_v48 = vld [vmem:[#allocation6 + $0x48] sm:$0xff]  }
  0xfe   : > { %1642 = vmatpush1.bf16.msra.mxu0 %v3120_v49  ;;  %1854 = vmatpush1.bf16.msra.mxu1 %v3123_v50  ;;  %v3197_v49 = vld [vmem:[#allocation6 + $0xc8] sm:$0xff]   ;;  %v298_v50 = vld [vmem:[%s3542_s13 + $0xa0] sm:$0xff] }
  0xff   : > { %1643 = vmatprep.subr.bf16.mxu0 %v3128_v51  ;;  %1855 = vmatprep.subr.bf16.mxu1 %v3131_v52  ;;  %v305_v51 = vld [vmem:[%s3542_s13 + $0xd8] sm:$0xff]  ;;  %v3198_v52 = vld [vmem:[#allocation6 + $0x8] sm:$0xff]  }
 0x102   : > { %1644 = vmatpush1.bf16.msra.mxu0 %v3126_v53  ;;  %1856 = vmatpush1.bf16.msra.mxu1 %v3129_v54  ;;  %v3199_v53 = vld [vmem:[#allocation6 + $0x88] sm:$0xff]   ;;  %v3200_v54 = vld [vmem:[#allocation6 + $0x50] sm:$0xff]  }
 0x103   : > { %1645 = vmatprep.subr.bf16.mxu0 %v3134_v55  ;;  %1857 = vmatprep.subr.bf16.mxu1 %v3137_v56  ;;  %v3201_v55 = vld [vmem:[#allocation6 + $0xd0] sm:$0xff]   ;;  %v319_v56 = vpack.c.bf16 %v305_v51, %v298_v50 }
 0x106   : > { %1646 = vmatpush1.bf16.msra.mxu0 %v3132_v57  ;;  %1858 = vmatpush1.bf16.msra.mxu1 %v3135_v58  ;;  %v3202_v57 = vld [vmem:[#allocation6 + $0x10] sm:$0xff]  }
 0x107   : > { %1647 = vmatprep.subr.bf16.mxu0 %v3140_v59  ;;  %1859 = vmatprep.subr.bf16.mxu1 %v3143_v60  ;;  %v3203_v58 = vld [vmem:[#allocation6 + $0x90] sm:$0xff]   ;;  %v3204_v59 = vld [vmem:[#allocation6 + $0x58] sm:$0xff]  }
 0x108   : > { %v3205_v60 = vld [vmem:[#allocation6 + $0xd8] sm:$0xff]  }
 0x10a   : > { %1648 = vmatpush1.bf16.msra.mxu0 %v3138_v61  ;;  %1860 = vmatpush1.bf16.msra.mxu1 %v3141_v62  ;;  %v3206_v61 = vld [vmem:[#allocation6 + $0x18] sm:$0xff]  }
 0x10b   : > { %1649 = vmatprep.subr.bf16.mxu0 %v3146_v63  ;;  %1861 = vmatprep.subr.bf16.mxu1 %v3149_v0  ;;  %v3207_v62 = vld [vmem:[#allocation6 + $0x98] sm:$0xff]   ;;  %v3208_v63 = vld [vmem:[#allocation6 + $0x60] sm:$0xff]  }
 0x10c   : > { %v3209_v0 = vld [vmem:[#allocation6 + $0xe0] sm:$0xff]  }
 0x10e   : > { %1650 = vmatpush1.bf16.msra.mxu0 %v3144_v1  ;;  %1862 = vmatpush1.bf16.msra.mxu1 %v3147_v2  ;;  %v3210_v1 = vld [vmem:[#allocation6 + $0x20] sm:$0xff]  }
 0x10f   : > { %1651 = vmatprep.subr.bf16.mxu0 %v3152_v3  ;;  %1863 = vmatprep.subr.bf16.mxu1 %v3155_v4  ;;  %v3211_v2 = vld [vmem:[#allocation6 + $0xa0] sm:$0xff]   ;;  %v3212_v3 = vld [vmem:[#allocation6 + $0x68] sm:$0xff]  }
 0x110   : > { %v3213_v4 = vld [vmem:[#allocation6 + $0xe8] sm:$0xff]  }
 0x112   : > { %1652 = vmatpush1.bf16.msra.mxu0 %v3150_v5  ;;  %1864 = vmatpush1.bf16.msra.mxu1 %v3153_v6  ;;  %v3214_v5 = vld [vmem:[#allocation6 + $0x28] sm:$0xff]  }
 0x113   : > { %1653 = vmatprep.subr.bf16.mxu0 %v3158_v7  ;;  %1865 = vmatprep.subr.bf16.mxu1 %v3161_v8  ;;  %v3215_v6 = vld [vmem:[#allocation6 + $0xa8] sm:$0xff]   ;;  %v3216_v7 = vld [vmem:[#allocation6 + $0x70] sm:$0xff]  }
 0x114   : > { %v3217_v8 = vld [vmem:[#allocation6 + $0xf0] sm:$0xff]  }
 0x116   : > { %1654 = vmatpush1.bf16.msra.mxu0 %v3156_v9  ;;  %1866 = vmatpush1.bf16.msra.mxu1 %v3159_v10  ;;  %v3218_v9 = vld [vmem:[#allocation6 + $0x30] sm:$0xff]  }
 0x117   : > { %1655 = vmatprep.subr.bf16.mxu0 %v3164_v11  ;;  %1867 = vmatprep.subr.bf16.mxu1 %v3167_v12  ;;  %v3219_v10 = vld [vmem:[#allocation6 + $0xb0] sm:$0xff]   ;;  %v3220_v11 = vld [vmem:[#allocation6 + $0x78] sm:$0xff]  }
 0x118   : > { %v3221_v12 = vld [vmem:[#allocation6 + $0xf8] sm:$0xff]  }
 0x11a   : > { %1656 = vmatpush1.bf16.msra.mxu0 %v3162_v13  ;;  %1868 = vmatpush1.bf16.msra.mxu1 %v3165_v14  ;;  %v3222_v13 = vld [vmem:[#allocation6 + $0x38] sm:$0xff]  }
 0x11b   : > { %1657 = vmatprep.subr.bf16.mxu0 %v3170_v15  ;;  %1869 = vmatprep.subr.bf16.mxu1 %v3173_v16  ;;  %v3223_v14 = vld [vmem:[#allocation6 + $0xb8] sm:$0xff]   ;;  %v518_v15 = vlaneseq }
 0x11d   : > { %v519_v16 = vshrl.u32 %v518_v15, 7 }
 0x11e   : > { %1658 = vmatpush1.bf16.msra.mxu0 %v3168_v17  ;;  %1870 = vmatpush1.bf16.msra.mxu1 %v3171_v18 }
 0x11f   : > { %1659 = vmatprep.subr.bf16.mxu0 %v3176_v19  ;;  %1871 = vmatprep.subr.bf16.mxu1 %v3179_v20  ;;  %v520_v17 = vsub.s32 0, %v519_v16  ;;  %v528_v18 = vsub.s32 2, %v519_v16  ;;  %v516_v19 = vld [vmem:[%s3610_s2] sm:$0xf]  ;;  %v524_v20 = vsub.s32 1, %v519_v16 }
 0x122   : > { %1660 = vmatpush1.bf16.msra.mxu0 %v3174_v21  ;;  %1872 = vmatpush1.bf16.msra.mxu1 %v3177_v22  ;;  %v532_v21 = vsub.s32 3, %v519_v16  ;;  %v521_v22 = vrot.slane %v516_v19, %v520_v17 }
 0x123   : > { %1661 = vmatprep.subr.bf16.mxu0 %v3182_v23  ;;  %1873 = vmatprep.subr.bf16.mxu1 %v3185_v24  ;;  %v529_v23 = vrot.slane %v516_v19, %v528_v18  ;;  %v525_v24 = vrot.slane %v516_v19, %v524_v20  ;;  %v2654_v20 = vld [vmem:[%s3612_s4] ss:$0 sm:$0xff] }
 0x126   : > { %1662 = vmatpush1.bf16.msra.mxu0 %v3180_v25  ;;  %1874 = vmatpush1.bf16.msra.mxu1 %v3183_v26  ;;  %v533_v25 = vrot.slane %v516_v19, %v532_v21 }
 0x127   : > { %1684 = vmatprep.subr.bf16.mxu0 %v3188_v29  ;;  %1896 = vmatprep.subr.bf16.mxu1 %v3191_v30 }
 0x129   : > { %1664 = vmatmul.mubr.bf16.vlgmr.msra.gmra.mrb[0].mxu0 %v310_v33  ;;  %1876 = vmatmul.mubr.bf16.vlgmr.msra.gmra.mrb[0].mxu1 %v310_v33 }
 0x12a   : > { %1685 = vmatpush1.bf16.msra.mxu0 %v3186_v34  ;;  %1897 = vmatpush1.bf16.msra.mxu1 %v3189_v35 }
 0x12b   : > { %1673 = vmatprep.mubr.bf16.mxu0 %v318_v36  ;;  %1885 = vmatprep.mubr.bf16.mxu1 %v318_v36 }
 0x12c   : > { %2708 = vmatprep.subr.bf16.mxu0 %v3192_v37  ;;  %2736 = vmatprep.subr.bf16.mxu1 %v3193_v38 }
 0x131   : > { %1674 = vmatmul.mubr.bf16.gmra.mrb[4].mxu0 %v317_v41  ;;  %1886 = vmatmul.mubr.bf16.gmra.mrb[4].mxu1 %v317_v41 }
 0x132   : > { %1716 = vmatprep.mubr.bf16.mxu0 %v3359_v42  ;;  %1928 = vmatprep.mubr.bf16.mxu1 %v3359_v42 }
 0x139   : > { %2650 = vmatmul.mubr.msk.bf16.vlgmr.msra.gmra.mrb[0].mxu0 %vm1518_vm0, %v312_v45  ;;  %2652 = vmatmul.mubr.msk.bf16.vlgmr.msra.gmra.mrb[0].mxu1 %vm1518_vm0, %v312_v45 }
 0x13a   : > { %1726 = vmatprep.mubr.bf16.mxu0 %v3359_v42  ;;  %1938 = vmatprep.mubr.bf16.mxu1 %v3359_v42 }
 0x13b   : > { %2709 = vmatpush3.bf16.msra.mxu0 %v3194_v46  ;;  %2737 = vmatpush3.bf16.msra.mxu1 %v3195_v47 }
 0x13c   : > { %2710 = vmatprep.subr.bf16.mxu0 %v3196_v48  ;;  %2738 = vmatprep.subr.bf16.mxu1 %v3197_v49 }
 0x13f   : > { %2711 = vmatpush3.bf16.msra.mxu0 %v3198_v52  ;;  %2739 = vmatpush3.bf16.msra.mxu1 %v3199_v53 }
 0x140   : > { %2712 = vmatprep.subr.bf16.mxu0 %v3200_v54  ;;  %2740 = vmatprep.subr.bf16.mxu1 %v3201_v55 }
 0x141   : > { %2651 = vmatmul.mubr.msk.bf16.gmra.mrb[4].mxu0 %vm1518_vm0, %v319_v56  ;;  %2653 = vmatmul.mubr.msk.bf16.gmra.mrb[4].mxu1 %vm1518_vm0, %v319_v56 }
 0x143   : > { %2713 = vmatpush3.bf16.msra.mxu0 %v3202_v57  ;;  %2741 = vmatpush3.bf16.msra.mxu1 %v3203_v58 }
 0x144   : > { %2714 = vmatprep.subr.bf16.mxu0 %v3204_v59  ;;  %2742 = vmatprep.subr.bf16.mxu1 %v3205_v60 }
 0x147   : > { %2715 = vmatpush3.bf16.msra.mxu0 %v3206_v61  ;;  %2743 = vmatpush3.bf16.msra.mxu1 %v3207_v62 }
 0x148   : > { %2716 = vmatprep.subr.bf16.mxu0 %v3208_v63  ;;  %2744 = vmatprep.subr.bf16.mxu1 %v3209_v0 }
 0x14b   : > { %2717 = vmatpush3.bf16.msra.mxu0 %v3210_v1  ;;  %2745 = vmatpush3.bf16.msra.mxu1 %v3211_v2 }
 0x14c   : > { %2718 = vmatprep.subr.bf16.mxu0 %v3212_v3  ;;  %2746 = vmatprep.subr.bf16.mxu1 %v3213_v4 }
 0x14f   : > { %2719 = vmatpush3.bf16.msra.mxu0 %v3214_v5  ;;  %2747 = vmatpush3.bf16.msra.mxu1 %v3215_v6 }
 0x150   : > { %2720 = vmatprep.subr.bf16.mxu0 %v3216_v7  ;;  %2748 = vmatprep.subr.bf16.mxu1 %v3217_v8 }
 0x153   : > { %2721 = vmatpush3.bf16.msra.mxu0 %v3218_v9  ;;  %2749 = vmatpush3.bf16.msra.mxu1 %v3219_v10 }
 0x154   : > { %2722 = vmatprep.subr.bf16.mxu0 %v3220_v11  ;;  %2750 = vmatprep.subr.bf16.mxu1 %v3221_v12 }
 0x157   : > { %2723 = vmatpush3.bf16.msra.mxu0 %v3222_v13  ;;  %2751 = vmatpush3.bf16.msra.mxu1 %v3223_v14 }
 0x20c   : > { %v1718_v26 = vpop.f32.mrb[0].mxu0  ;;  %v1930_v27 = vpop.f32.mrb[0].mxu1 }
 0x20d   : > { %v2764_v28 = vadd.f32 %v1718_v26, %v521_v22  ;;  %v2772_v29 = vadd.f32 %v1930_v27, %v529_v23  ;;  %v1720_v30 = vpop.f32.mrb[1].mxu0  ;;  %v1932_v31 = vpop.f32.mrb[1].mxu1 }
 0x20e   : > { %v2765_v32 = vadd.f32 %v1720_v30, %v525_v24  ;;  %v2773_v33 = vadd.f32 %v1932_v31, %v533_v25  ;;  %v1722_v34 = vpop.f32.mrb[2].mxu0  ;;  %v1934_v35 = vpop.f32.mrb[2].mxu1 }
 0x20f   : > { %v2766_v36 = vadd.f32 %v1722_v34, %v521_v22  ;;  %v2774_v37 = vadd.f32 %v1934_v35, %v529_v23  ;;  %v1724_v38 = vpop.f32.mrb[3].mxu0  ;;  %v1936_v39 = vpop.f32.mrb[3].mxu1  ;;  %v1949_v42 = vmax.f32 %v2764_v28, 0.0  ;;  %v1951_v43 = vmax.f32 %v2772_v29, 0.0 }
 0x210   : > { %v2767_v40 = vadd.f32 %v1724_v38, %v525_v24  ;;  %v2775_v41 = vadd.f32 %v1936_v39, %v533_v25  ;;  %v1950_v46 = vmax.f32 %v2765_v32, 0.0  ;;  %v1952_v47 = vmax.f32 %v2773_v33, 0.0 }
 0x211   : > { %v1953_v44 = vmax.f32 %v2766_v36, 0.0  ;;  %v1955_v45 = vmax.f32 %v2774_v37, 0.0 }
 0x212   : > { %v1954_v48 = vmax.f32 %v2767_v40, 0.0  ;;  %v1956_v49 = vmax.f32 %v2775_v41, 0.0 }
 0x213   : > { %v1965_v50 = vpack.c.bf16 %v1953_v44, %v1949_v42  ;;  %v1967_v51 = vpack.c.bf16 %v1955_v45, %v1951_v43 }
 0x214   : > { %v1966_v52 = vpack.c.bf16 %v1954_v48, %v1950_v46  ;;  %v1968_v53 = vpack.c.bf16 %v1956_v49, %v1952_v47  ;;  %v1728_v54 = vpop.f32.mrb[4].mxu0  ;;  %v1940_v55 = vpop.f32.mrb[4].mxu1 }
 0x215   : > { %v2768_v56 = vadd.f32 %v1728_v54, %v521_v22  ;;  %v2776_v57 = vadd.f32 %v1940_v55, %v529_v23  ;;  %v1730_v58 = vpop.f32.mrb[5].mxu0  ;;  %v1942_v59 = vpop.f32.mrb[5].mxu1 }
 0x216   : > { %v2769_v60 = vadd.f32 %v1730_v58, %v525_v24  ;;  %v2777_v61 = vadd.f32 %v1942_v59, %v533_v25  ;;  %v1732_v62 = vpop.f32.mrb[6].mxu0  ;;  %v1944_v63 = vpop.f32.mrb[6].mxu1  ;;  %2268 = vmatprep.mubr.bf16.mxu0 %v1966_v52  ;;  %2317 = vmatprep.mubr.bf16.mxu1 %v1968_v53 }
 0x217   : > { %v2770_v0 = vadd.f32 %v1732_v62, %v521_v22  ;;  %v2778_v1 = vadd.f32 %v1944_v63, %v529_v23  ;;  %v1734_v2 = vpop.f32.mrb[7].mxu0  ;;  %v1946_v3 = vpop.f32.mrb[7].mxu1  ;;  %2269 = vmatmul.mubr.bf16.vlgmr.msra.gmra.mrb[8].mxu0 %v1965_v50  ;;  %2318 = vmatmul.mubr.bf16.vlgmr.msra.gmra.mrb[8].mxu1 %v1967_v51  ;;  %v1957_v6 = vmax.f32 %v2768_v56, 0.0  ;;  %v1959_v7 = vmax.f32 %v2776_v57, 0.0 }
 0x218   : > { %v2771_v4 = vadd.f32 %v1734_v2, %v525_v24  ;;  %v2779_v5 = vadd.f32 %v1946_v3, %v533_v25  ;;  %v1958_v10 = vmax.f32 %v2769_v60, 0.0  ;;  %v1960_v11 = vmax.f32 %v2777_v61, 0.0 }
 0x219   : > { %v1961_v8 = vmax.f32 %v2770_v0, 0.0  ;;  %v1963_v9 = vmax.f32 %v2778_v1, 0.0 }
 0x21a   : > { %v1962_v12 = vmax.f32 %v2771_v4, 0.0  ;;  %v1964_v13 = vmax.f32 %v2779_v5, 0.0 }
 0x21b   : > { %v1969_v14 = vpack.c.bf16 %v1961_v8, %v1957_v6  ;;  %v1971_v15 = vpack.c.bf16 %v1963_v9, %v1959_v7 }
 0x21c   : > { %v1970_v16 = vpack.c.bf16 %v1962_v12, %v1958_v10  ;;  %v1972_v17 = vpack.c.bf16 %v1964_v13, %v1960_v11 }
 0x21e   : > { %2276 = vmatprep.mubr.bf16.mxu0 %v1970_v16  ;;  %2325 = vmatprep.mubr.bf16.mxu1 %v1972_v17 }
 0x21f   : > { %2277 = vmatmul.mubr.bf16.gmra.mrb[12].mxu0 %v1969_v14  ;;  %2326 = vmatmul.mubr.bf16.gmra.mrb[12].mxu1 %v1971_v15 }
 0x2ea   : > { %v2724_v18 = vpop.f32.mrb[8].mxu0  ;;  %v2752_v19 = vpop.f32.mrb[8].mxu1 }
 0x2eb   : > { %v2725_v21 = vpop.f32.mrb[9].mxu0  ;;  %v2753_v22 = vpop.f32.mrb[9].mxu1 }
 0x2ec   : > { %v2726_v23 = vadd.f32 %v2725_v21, %v2724_v18  ;;  %v2754_v24 = vadd.f32 %v2753_v22, %v2752_v19  ;;  %v2727_v25 = vpop.f32.mrb[10].mxu0  ;;  %v2755_v26 = vpop.f32.mrb[10].mxu1 }
 0x2ed   : > { %v2728_v27 = vpop.f32.mrb[11].mxu0  ;;  %v2756_v28 = vpop.f32.mrb[11].mxu1 }
 0x2ee   : > { %v2271_v29 = vadd.f32 %v2726_v23, %v2654_v20  ;;  %v2729_v30 = vadd.f32 %v2728_v27, %v2727_v25  ;;  %v2757_v31 = vadd.f32 %v2756_v28, %v2755_v26 }
 0x2f0   : > { %v2320_v32 = vadd.f32 %v2754_v24, %v2271_v29  ;;  %v2274_v33 = vadd.f32 %v2729_v30, %v2654_v20 }
 0x2f2   : > { %v2323_v34 = vadd.f32 %v2757_v31, %v2274_v33  ;;  %v2730_v35 = vpop.f32.mrb[12].mxu0  ;;  %v2758_v36 = vpop.f32.mrb[12].mxu1 }
 0x2f3   : > { %v2731_v37 = vpop.f32.mrb[13].mxu0  ;;  %v2759_v38 = vpop.f32.mrb[13].mxu1 }
 0x2f4   : > { %v2700_v39 = vpack.c.bf16 %v2323_v34, %v2320_v32  ;;  %v2732_v40 = vadd.f32 %v2731_v37, %v2730_v35  ;;  %v2760_v41 = vadd.f32 %v2759_v38, %v2758_v36  ;;  %v2733_v42 = vpop.f32.mrb[14].mxu0  ;;  %v2761_v43 = vpop.f32.mrb[14].mxu1 }
 0x2f5   : > { %v2734_v44 = vpop.f32.mrb[15].mxu0  ;;  %v2762_v45 = vpop.f32.mrb[15].mxu1 }
 0x2f6   : > { %2701 = vst [vmem:[%s275_s27] sm:$0xff] %v2700_v39   ;;  %v2279_v46 = vadd.f32 %v2732_v40, %v2654_v20  ;;  %v2735_v47 = vadd.f32 %v2734_v44, %v2733_v42  ;;  %v2763_v48 = vadd.f32 %v2762_v45, %v2761_v43 }
 0x2f8   : > { %v2328_v49 = vadd.f32 %v2760_v41, %v2279_v46  ;;  %v2282_v50 = vadd.f32 %v2735_v47, %v2654_v20 }
 0x2fa   : > { %v2331_v51 = vadd.f32 %v2763_v48, %v2282_v50 }
 0x2fc   : > { %v2705_v52 = vpack.c.bf16 %v2331_v51, %v2328_v49 }
 0x2fe   : > { %2707 = vst [vmem:[%s275_s27 + $0x8] sm:$0xff] %v2705_v52  }
 0x2ff PF: > { %p16_p6 = scmp.ge.s32.totalorder %s3486_s14, 4   ;;  %s3626_s18 = smov %s3340_s19 }
 0x300   : > { %s3627_s19 = smov %s3344_s20  ;;  %s3628_s20 = smov %s3495_s17 }
 0x301   : > { %s3629_s21 = smov %s3486_s14  ;;  %18 = sbr.rel (!%p16_p6) target bundleno = 4 (0x4), region = 88 }
 0x308   :  { %2376 = vsyncpa [#allocation3], 1 }
 0x309   :  { %2378 = vsyncpa [#allocation3 + $0x1], 1 }
 0x30a   :  { %2379 = vsyncpa [#allocation5], 1 }

</bundles_post_ra>
